<compile_context>
chip_gen: v6e
topology: v6e:2x2x1
jax: 0.10.0
libtpu: 0.0.40
codegen_flags: <defaults>
</compile_context>

<pallas_src>
import numpy as np
import jax
import jax.numpy as jnp
from jax.experimental import pallas as pl
from jax.experimental.pallas import tpu as pltpu

D_K = 64
OUT_LEN = 6          # predict_yaw=True
OUT_PAD = 8          # pad final layer to 8 channel rows (sublane-aligned)
MIN_STDEV = 0.01
CORR_T = 0.9

# dot_general dimension numbers: contract lhs dim 1 with rhs dim 1 ("A @ B^T")
_NT_DIMS = (((1,), (1,)), ((), ()))


def _softplus(x):
    # numerically-stable softplus using only ops with guaranteed Mosaic
    # lowerings (max / abs / exp / log); log1p accuracy loss is < 1e-7 here.
    return jnp.maximum(x, 0.0) + jnp.log(1.0 + jnp.exp(-jnp.abs(x)))


def output_model_kernel(x_ref, w1t_ref, b1_ref, w2t_ref, b2_ref,
                        w3t_ref, b3_ref, o_ref):
    mm_dtype = w1t_ref.dtype                       # bf16 or f32 (set by prep)
    x = x_ref[...]                                 # (tile, d_k)
    if x.dtype != mm_dtype:
        x = x.astype(mm_dtype)

    # Layer 1: NT matmul (contract both feature axes) -> feature-major (d_k, tile)
    h = jax.lax.dot_general(w1t_ref[...], x, _NT_DIMS,
                            preferred_element_type=jnp.float32)
    h = jnp.maximum(h + b1_ref[...], 0.0)          # f32 bias + ReLU

    # Layer 2: plain NN matmul, stays feature-major / lane-dense
    h = jnp.dot(w2t_ref[...], h.astype(mm_dtype),
                preferred_element_type=jnp.float32)
    h = jnp.maximum(h + b2_ref[...], 0.0)          # (d_k, tile)

    # Layer 3: padded to 8 output channel rows -> (OUT_PAD, tile)
    p = jnp.dot(w3t_ref[...], h.astype(mm_dtype),
                preferred_element_type=jnp.float32)
    p = p + b3_ref[...]                            # (OUT_PAD, tile) f32

    # Epilogue: whole-tile transcendentals (EUP slot) + sublane-iota selects
    # (no width-1 slices / concatenation).
    row = jax.lax.broadcasted_iota(jnp.int32, p.shape, 0)
    sp = _softplus(p) + MIN_STDEV
    th = jnp.tanh(p) * CORR_T
    out = jnp.where((row == 2) | (row == 3), sp, p)   # x_sigma / y_sigma rows
    out = jnp.where(row == 4, th, out)                # rho row

    # Small in-kernel (8, tile) -> (tile, 8) transpose (XLU), then store only
    # the 6 real channels: the output block's last dim equals the full array
    # dim, so the wrapper needs no transpose/slice afterwards.
    o_ref[...] = out.T[:, :OUT_LEN].astype(o_ref.dtype)


def prepare_params(params, *, use_bf16=True):
    """One-time parameter preprocessing (hoisted out of the forward path)."""
    w1, b1, w2, b2, w3, b3 = params
    mm = jnp.bfloat16 if use_bf16 else jnp.float32
    w1t = jnp.asarray(w1, jnp.float32).T.astype(mm)            # (d_k, d_k)
    w2t = jnp.asarray(w2, jnp.float32).T.astype(mm)            # (d_k, d_k)
    w3t = jnp.zeros((OUT_PAD, D_K), jnp.float32)
    w3t = w3t.at[:OUT_LEN].set(jnp.asarray(w3, jnp.float32).T).astype(mm)
    b1c = jnp.asarray(b1, jnp.float32).reshape(D_K, 1)
    b2c = jnp.asarray(b2, jnp.float32).reshape(D_K, 1)
    b3c = jnp.zeros((OUT_PAD, 1), jnp.float32).at[:OUT_LEN, 0].set(
        jnp.asarray(b3, jnp.float32))
    return (w1t, b1c, w2t, b2c, w3t, b3c)


def _round_up(x, m):
    return -(-x // m) * m


def _pick_tile(n_rows, tile_n):
    # Lane-dense tiles: multiples of 128 (row axis becomes the lane axis of
    # every feature-major intermediate).
    tile = max(128, min(_round_up(int(tile_n), 128), _round_up(n_rows, 128)))
    # Ensure the ("parallel",) grid has >= 2 steps when there is enough work,
    # so both TensorCores of a v7x chip get a share.
    if pl.cdiv(n_rows, tile) < 2 and n_rows >= 256:
        tile = max(128, _round_up(pl.cdiv(n_rows, 2), 128))
    return tile


def output_model_forward(agent_latent_state, prepared_params, *, tile_n=2048):
    """agent_latent_state: (T, BK, d_k) f32 or bf16 -> (T, BK, 6) float32."""
    T, BK, d_k = agent_latent_state.shape
    assert d_k == D_K
    n_rows = T * BK
    x = agent_latent_state.reshape(n_rows, D_K)        # free reshape, no pad

    w1t, b1c, w2t, b2c, w3t, b3c = prepared_params
    tile = _pick_tile(n_rows, tile_n)
    num_blocks = pl.cdiv(n_rows, tile)

    x_spec_kwargs = {}
    if num_blocks >= 3:
        # Third buffer on the only real HBM stream: hides DMA latency bubbles.
        x_spec_kwargs["pipeline_mode"] = pl.Buffered(3)
    x_spec = pl.BlockSpec((tile, D_K), lambda i: (i, 0), **x_spec_kwargs)

    full = lambda i: (0, 0)   # weights / biases are not tiled over the grid

    x_bytes = jnp.dtype(x.dtype).itemsize
    w_bytes = jnp.dtype(w1t.dtype).itemsize
    cost = pl.CostEstimate(
        flops=int(2 * n_rows * (2 * D_K * D_K + D_K * OUT_PAD)),
        transcendentals=int(2 * n_rows * OUT_PAD),
        bytes_accessed=int(n_rows * D_K * x_bytes + 4 * n_rows * OUT_LEN
                           + w_bytes * D_K * (2 * D_K + OUT_PAD)
                           + 4 * (2 * D_K + OUT_PAD)),
    )

    out = pl.pallas_call(
        output_model_kernel,
        out_shape=jax.ShapeDtypeStruct((n_rows, OUT_LEN), jnp.float32),
        grid_spec=pltpu.PrefetchScalarGridSpec(
            num_scalar_prefetch=0,
            grid=(num_blocks,),
            in_specs=[
                x_spec,                                          # x rows
                pl.BlockSpec((D_K, D_K), full),                  # w1^T
                pl.BlockSpec((D_K, 1), full),                    # b1 (col)
                pl.BlockSpec((D_K, D_K), full),                  # w2^T
                pl.BlockSpec((D_K, 1), full),                    # b2 (col)
                pl.BlockSpec((OUT_PAD, D_K), full),              # w3^T (padded)
                pl.BlockSpec((OUT_PAD, 1), full),                # b3 (padded col)
            ],
            out_specs=pl.BlockSpec((tile, OUT_LEN), lambda i: (i, 0)),
        ),
        compiler_params=pltpu.CompilerParams(
            dimension_semantics=("parallel",)),
        cost_estimate=cost,
    )(x, w1t, b1c, w2t, b2c, w3t, b3c)

    # Contiguous (N, 6) -> (T, BK, 6): metadata-only reshape, no extra HBM pass.
    return out.reshape(T, BK, OUT_LEN)


def init_params(key):
    """Xavier-normal weights (gain=sqrt(2)), zero biases — matches init_()."""
    gain = float(np.sqrt(2.0))

    def xavier_normal(k, fan_in, fan_out):
        std = gain * np.sqrt(2.0 / (fan_in + fan_out))
        return std * jax.random.normal(k, (fan_in, fan_out), dtype=jnp.float32)

    k1, k2, k3 = jax.random.split(key, 3)
    w1 = xavier_normal(k1, D_K, D_K)
    b1 = jnp.zeros((D_K,), jnp.float32)
    w2 = xavier_normal(k2, D_K, D_K)
    b2 = jnp.zeros((D_K,), jnp.float32)
    w3 = xavier_normal(k3, D_K, OUT_LEN)
    b3 = jnp.zeros((OUT_LEN,), jnp.float32)
    return (w1, b1, w2, b2, w3, b3)


def reference_forward(agent_latent_state, params, *, use_bf16=False):
    """Pure-JAX reference of the PyTorch forward (optionally with the same
    bf16 matmul-operand policy as the kernel)."""
    w1, b1, w2, b2, w3, b3 = params
    T, BK, _ = agent_latent_state.shape
    mm = jnp.bfloat16 if use_bf16 else jnp.float32
    x = agent_latent_state.reshape(-1, D_K).astype(jnp.float32)

    def dense(v, w, b):
        return jnp.dot(v.astype(mm), w.astype(mm),
                       preferred_element_type=jnp.float32) + b

    h = jax.nn.relu(dense(x, w1, b1))
    h = jax.nn.relu(dense(h, w2, b2))
    p = dense(h, w3, b3).reshape(T, BK, OUT_LEN)
    x_mean = p[:, :, 0]
    y_mean = p[:, :, 1]
    x_sigma = jax.nn.softplus(p[:, :, 2]) + MIN_STDEV
    y_sigma = jax.nn.softplus(p[:, :, 3]) + MIN_STDEV
    rho = jnp.tanh(p[:, :, 4]) * CORR_T
    yaws = p[:, :, 5]
    return jnp.stack([x_mean, y_mean, x_sigma, y_sigma, rho, yaws], axis=2)


if __name__ == "__main__":
    key = jax.random.PRNGKey(0)
    k_param, k1, k2, k3 = jax.random.split(key, 4)
    params = init_params(k_param)

    # Case 1: exact f32 path, tiny ragged N (single partial block, no padding).
    prep_f32 = prepare_params(params, use_bf16=False)
    x1 = jax.random.normal(k1, (3, 5, D_K), dtype=jnp.float32)
    out1 = jax.block_until_ready(output_model_forward(x1, prep_f32))
    ref1 = reference_forward(x1, params, use_bf16=False)
    np.testing.assert_allclose(np.asarray(out1), np.asarray(ref1),
                               rtol=2e-4, atol=2e-4)
    assert out1.shape == (3, 5, OUT_LEN)

    # Case 2: bf16 matmul path (default prep), f32 latent input.
    prep_bf16 = prepare_params(params, use_bf16=True)
    x2 = jax.random.normal(k2, (4, 8, D_K), dtype=jnp.float32)
    out2 = jax.block_until_ready(output_model_forward(x2, prep_bf16))
    ref2 = reference_forward(x2, params, use_bf16=True)
    np.testing.assert_allclose(np.asarray(out2), np.asarray(ref2),
                               rtol=1e-3, atol=1e-3)
    assert out2.shape == (4, 8, OUT_LEN)

    # Case 3: bf16 latent (halved HBM read), multi-block ragged grid
    # (N=650, tile=128 -> 6 steps) exercising pl.Buffered(3) and edge clamping.
    x3 = jax.random.normal(k3, (5, 130, D_K),
                           dtype=jnp.float32).astype(jnp.bfloat16)
    out3 = jax.block_until_ready(
        output_model_forward(x3, prep_bf16, tile_n=128))
    ref3 = reference_forward(x3.astype(jnp.float32), params, use_bf16=True)
    np.testing.assert_allclose(np.asarray(out3), np.asarray(ref3),
                               rtol=1e-3, atol=1e-3)
    assert out3.shape == (5, 130, OUT_LEN)

    print("KERNEL_OK")
</pallas_src>

<mosaic_0001>
module attributes {stable_mosaic.version = 11 : i64} {
  func.func @output_model_kernel(%arg0: i32, %arg1: memref<128x64xf32, #tpu.memory_space<vmem>>, %arg2: memref<64x64xf32, #tpu.memory_space<vmem>>, %arg3: memref<64x1xf32, #tpu.memory_space<vmem>>, %arg4: memref<64x64xf32, #tpu.memory_space<vmem>>, %arg5: memref<64x1xf32, #tpu.memory_space<vmem>>, %arg6: memref<8x64xf32, #tpu.memory_space<vmem>>, %arg7: memref<8x1xf32, #tpu.memory_space<vmem>>, %arg8: memref<128x6xf32, #tpu.memory_space<vmem>>) attributes {dimension_semantics = [#tpu.dimension_semantics<parallel>], iteration_bounds = array<i64: 1>, scalar_prefetch = 0 : i64, scratch_operands = 0 : i64, tpu.core_type = #tpu.core_type<tc>, window_params = [{transform_indices = @transform_0, window_bounds = array<i64: 128, 64>}, {pipeline_mode = #tpu.pipeline_mode<synchronous>, transform_indices = @transform_1, window_bounds = array<i64: 64, 64>}, {pipeline_mode = #tpu.pipeline_mode<synchronous>, transform_indices = @transform_2, window_bounds = array<i64: 64, 1>}, {pipeline_mode = #tpu.pipeline_mode<synchronous>, transform_indices = @transform_3, window_bounds = array<i64: 64, 64>}, {pipeline_mode = #tpu.pipeline_mode<synchronous>, transform_indices = @transform_4, window_bounds = array<i64: 64, 1>}, {pipeline_mode = #tpu.pipeline_mode<synchronous>, transform_indices = @transform_5, window_bounds = array<i64: 8, 64>}, {pipeline_mode = #tpu.pipeline_mode<synchronous>, transform_indices = @transform_6, window_bounds = array<i64: 8, 1>}, {transform_indices = @transform_7, window_bounds = array<i64: 128, 6>}]} {
    %c0 = arith.constant 0 : index
    %c0_0 = arith.constant 0 : index
    %0 = vector.load %arg1[%c0, %c0_0] : memref<128x64xf32, #tpu.memory_space<vmem>>, vector<128x64xf32>
    %c0_1 = arith.constant 0 : index
    %c0_2 = arith.constant 0 : index
    %1 = vector.load %arg2[%c0_1, %c0_2] : memref<64x64xf32, #tpu.memory_space<vmem>>, vector<64x64xf32>
    %cst = arith.constant dense<0.000000e+00> : vector<64x128xf32>
    %2 = tpu.matmul %1, %0, %cst {dimension_numbers = #tpu.dot_dimension_numbers<[1], [1], [0], [0], [0, 0, 1, 0], [], []>} : vector<64x64xf32>, vector<128x64xf32>, vector<64x128xf32> -> vector<64x128xf32>
    %c0_3 = arith.constant 0 : index
    %c0_4 = arith.constant 0 : index
    %3 = vector.load %arg3[%c0_3, %c0_4] : memref<64x1xf32, #tpu.memory_space<vmem>>, vector<64x1xf32>
    %4 = vector.broadcast %3 : vector<64x1xf32> to vector<64x128xf32>
    %5 = arith.addf %2, %4 : vector<64x128xf32>
    %cst_5 = arith.constant 0.000000e+00 : f32
    %6 = vector.broadcast %cst_5 : f32 to vector<64x128xf32>
    %7 = arith.maximumf %5, %6 : vector<64x128xf32>
    %c0_6 = arith.constant 0 : index
    %c0_7 = arith.constant 0 : index
    %8 = vector.load %arg4[%c0_6, %c0_7] : memref<64x64xf32, #tpu.memory_space<vmem>>, vector<64x64xf32>
    %cst_8 = arith.constant dense<0.000000e+00> : vector<64x128xf32>
    %9 = tpu.matmul %8, %7, %cst_8 {dimension_numbers = #tpu.dot_dimension_numbers<[1], [0], [0], [1], [0, 0, 1, 1], [], []>} : vector<64x64xf32>, vector<64x128xf32>, vector<64x128xf32> -> vector<64x128xf32>
    %c0_9 = arith.constant 0 : index
    %c0_10 = arith.constant 0 : index
    %10 = vector.load %arg5[%c0_9, %c0_10] : memref<64x1xf32, #tpu.memory_space<vmem>>, vector<64x1xf32>
    %11 = vector.broadcast %10 : vector<64x1xf32> to vector<64x128xf32>
    %12 = arith.addf %9, %11 : vector<64x128xf32>
    %cst_11 = arith.constant 0.000000e+00 : f32
    %13 = vector.broadcast %cst_11 : f32 to vector<64x128xf32>
    %14 = arith.maximumf %12, %13 : vector<64x128xf32>
    %c0_12 = arith.constant 0 : index
    %c0_13 = arith.constant 0 : index
    %15 = vector.load %arg6[%c0_12, %c0_13] : memref<8x64xf32, #tpu.memory_space<vmem>>, vector<8x64xf32>
    %cst_14 = arith.constant dense<0.000000e+00> : vector<8x128xf32>
    %16 = tpu.matmul %15, %14, %cst_14 {dimension_numbers = #tpu.dot_dimension_numbers<[1], [0], [0], [1], [0, 0, 1, 1], [], []>} : vector<8x64xf32>, vector<64x128xf32>, vector<8x128xf32> -> vector<8x128xf32>
    %c0_15 = arith.constant 0 : index
    %c0_16 = arith.constant 0 : index
    %17 = vector.load %arg7[%c0_15, %c0_16] : memref<8x1xf32, #tpu.memory_space<vmem>>, vector<8x1xf32>
    %18 = vector.broadcast %17 : vector<8x1xf32> to vector<8x128xf32>
    %19 = arith.addf %16, %18 : vector<8x128xf32>
    %20 = tpu.iota {dimensions = array<i32: 0>} : vector<8x128xi32>
    %cst_17 = arith.constant 0.000000e+00 : f32
    %21 = vector.broadcast %cst_17 : f32 to vector<8x128xf32>
    %22 = arith.maximumf %19, %21 : vector<8x128xf32>
    %23 = math.absf %19 : vector<8x128xf32>
    %cst_18 = arith.constant 0.000000e+00 : f32
    %24 = vector.broadcast %cst_18 : f32 to vector<8x128xf32>
    %25 = arith.subf %24, %23 : vector<8x128xf32>
    %26 = math.exp %25 : vector<8x128xf32>
    %cst_19 = arith.constant 1.000000e+00 : f32
    %27 = vector.broadcast %cst_19 : f32 to vector<8x128xf32>
    %28 = arith.addf %27, %26 : vector<8x128xf32>
    %29 = math.log %28 : vector<8x128xf32>
    %30 = arith.addf %22, %29 : vector<8x128xf32>
    %cst_20 = arith.constant 0.00999999977 : f32
    %31 = vector.broadcast %cst_20 : f32 to vector<8x128xf32>
    %32 = arith.addf %30, %31 : vector<8x128xf32>
    %33 = math.tanh %19 : vector<8x128xf32>
    %cst_21 = arith.constant 0.899999976 : f32
    %34 = vector.broadcast %cst_21 : f32 to vector<8x128xf32>
    %35 = arith.mulf %33, %34 : vector<8x128xf32>
    %c2_i32 = arith.constant 2 : i32
    %36 = vector.broadcast %c2_i32 : i32 to vector<8x128xi32>
    %37 = arith.cmpi eq, %20, %36 : vector<8x128xi32>
    %c3_i32 = arith.constant 3 : i32
    %38 = vector.broadcast %c3_i32 : i32 to vector<8x128xi32>
    %39 = arith.cmpi eq, %20, %38 : vector<8x128xi32>
    %40 = arith.ori %37, %39 : vector<8x128xi1>
    %41 = arith.select %40, %32, %19 : vector<8x128xi1>, vector<8x128xf32>
    %c4_i32 = arith.constant 4 : i32
    %42 = vector.broadcast %c4_i32 : i32 to vector<8x128xi32>
    %43 = arith.cmpi eq, %20, %42 : vector<8x128xi32>
    %44 = arith.select %43, %35, %41 : vector<8x128xi1>, vector<8x128xf32>
    %45 = tpu.transpose %44, [1, 0] : vector<8x128xf32> -> vector<128x8xf32>
    %46 = vector.extract_strided_slice %45 {offsets = [0, 0], sizes = [128, 6], strides = [1, 1]} : vector<128x8xf32> to vector<128x6xf32>
    %c0_22 = arith.constant 0 : index
    %c0_23 = arith.constant 0 : index
    %47 = vector.load %arg8[%c0_22, %c0_23] : memref<128x6xf32, #tpu.memory_space<vmem>>, vector<128x6xf32>
    tpu.vector_store %arg8[%c0_22, %c0_23], %46 {strides = array<i32>} : memref<128x6xf32, #tpu.memory_space<vmem>>, vector<128x6xf32>,
    return
  }
  func.func @transform_0(%arg0: i32) -> (i32, i32) {
    %c0_i32 = arith.constant 0 : i32
    %c0_i32_0 = arith.constant 0 : i32
    return %arg0, %c0_i32 : i32, i32
  }
  func.func @transform_1(%arg0: i32) -> (i32, i32) {
    %c0_i32 = arith.constant 0 : i32
    %c0_i32_0 = arith.constant 0 : i32
    %c0_i32_1 = arith.constant 0 : i32
    return %c0_i32, %c0_i32_0 : i32, i32
  }
  func.func @transform_2(%arg0: i32) -> (i32, i32) {
    %c0_i32 = arith.constant 0 : i32
    %c0_i32_0 = arith.constant 0 : i32
    %c0_i32_1 = arith.constant 0 : i32
    return %c0_i32, %c0_i32_0 : i32, i32
  }
  func.func @transform_3(%arg0: i32) -> (i32, i32) {
    %c0_i32 = arith.constant 0 : i32
    %c0_i32_0 = arith.constant 0 : i32
    %c0_i32_1 = arith.constant 0 : i32
    return %c0_i32, %c0_i32_0 : i32, i32
  }
  func.func @transform_4(%arg0: i32) -> (i32, i32) {
    %c0_i32 = arith.constant 0 : i32
    %c0_i32_0 = arith.constant 0 : i32
    %c0_i32_1 = arith.constant 0 : i32
    return %c0_i32, %c0_i32_0 : i32, i32
  }
  func.func @transform_5(%arg0: i32) -> (i32, i32) {
    %c0_i32 = arith.constant 0 : i32
    %c0_i32_0 = arith.constant 0 : i32
    %c0_i32_1 = arith.constant 0 : i32
    return %c0_i32, %c0_i32_0 : i32, i32
  }
  func.func @transform_6(%arg0: i32) -> (i32, i32) {
    %c0_i32 = arith.constant 0 : i32
    %c0_i32_0 = arith.constant 0 : i32
    %c0_i32_1 = arith.constant 0 : i32
    return %c0_i32, %c0_i32_0 : i32, i32
  }
  func.func @transform_7(%arg0: i32) -> (i32, i32) {
    %c0_i32 = arith.constant 0 : i32
    %c0_i32_0 = arith.constant 0 : i32
    return %arg0, %c0_i32 : i32, i32
  }
}

</mosaic_0001>

<bundles_post_ra>
// kernel: tpu_custom_call.1
= control target key start
LH: loop header
LB: loop body
LE: loop exit
PB: predicated region body
PF: predicated region fallthrough
CT: control target
= control target key end

     0   :  { %12 = vsyncpa [#allocation3], 0  ;;  %s1101_s0 = inlined_call_operand.hbm [shape: f32[15,64], index: 0, kind: input, shape index: {}]   ;;  %s1102_s1 = inlined_call_operand.vmem [shape: f32[64,64], index: 1, kind: input, shape index: {}]   ;;  %s1103_s2 = inlined_call_operand.vmem [shape: f32[64,1], index: 2, kind: input, shape index: {}]   ;;  %s1104_s3 = inlined_call_operand.vmem [shape: f32[64,64], index: 3, kind: input, shape index: {}]   ;;  %s1105_s4 = inlined_call_operand.vmem [shape: f32[64,1], index: 4, kind: input, shape index: {}]   ;;  %s1106_s5 = inlined_call_operand.vmem [shape: f32[8,64], index: 5, kind: input, shape index: {}]   ;;  %s1107_s6 = inlined_call_operand.vmem [shape: f32[8,1], index: 6, kind: input, shape index: {}]   ;;  %s1108_s7 = inlined_call_operand.vmem [shape: f32[15,6], index: 7, kind: output, shape index: {}]  }
   0x1   :  { %17 = vsyncadd [#allocation3], 1792  ;;  %s895_s24 = smov [#allocation2]  }
   0x2   :  { %s18_s25 = sshll.u32 %s895_s24, 4  ;;  %s19_s25 = int_to_ptr.vmem [resolvable:$true] %s18_s25 }
   0x3   :  { %s881_s26 = scalar_lea.vmem %s19_s25, 256  ;;  %s885_s27 = scalar_lea.vmem %s19_s25, 2048 }
   0x4   :  { %p882_p0 = scmp.ne.s32.totalorder %s19_s25, %s881_s26  ;;  %p886_p1 = scmp.lt.s32.totalorder %s19_s25, %s19_s25 }
   0x5   :  { %p887_p2 = scmp.lt.s32.totalorder %s885_s27, %s881_s26 }
   0x7   :  { %p888_p3 = por %p887_p2, %p886_p1 }
   0x9   :  { %p889_p4 = pnand %p888_p3, %p882_p0 }
   0xb   :  { %892 = shalt.err (!%p889_p4)
}
   0xc   :  { %s896_s28 = smov 128   ;;  %s897_s29 = smov 8  }
   0xd   :  { %24 = dma.hbm_to_vmem [thread:$0]  %s1101_s0, 256, %s19_s25, [#allocation3], %s896_s28, %s896_s28, %s897_s29  }
   0xe   :  { %893 = dma.done.wait [#allocation3], 2048  }
   0xf   :  { %894 = vsyncadd [#allocation3], 4294965248  ;;  %v898_v0 = vmov 0   ;;  %vm112_vm0 = vcmask 523264   ;;  %v55_v1 = vld [vmem:[#allocation2 + $0x78] sm:$0xff]  ;;  %v54_v2 = vld [vmem:[#allocation2 + $0x70] sm:$0xff] }
  0x10   :  { %865 = vset.pattern.permute.xlu0 %v898_v0  ;;  %866 = vset.pattern.permute.xlu1 %v898_v0  ;;  %v53_v3 = vld [vmem:[#allocation2 + $0x68] sm:$0xff]  ;;  %v56_v4 = vld [vmem:[%s1102_s1] sm:$0xff]  ;;  %v71_v6 = vld [vmem:[%s1103_s2 + $0x38] sm:$0xff]  ;;  %vm900_vm1 = vmmov 0   ;;  %vm623_vm6 = vcmask 48128  }
  0x11   :  { %768 = vmatprep.subr.msk.mxu0 %vm112_vm0, %v55_v1  ;;  %800 = vmatprep.mubr.msk.f32.mxu0 %vm112_vm0, %v56_v4  ;;  %v52_v5 = vld [vmem:[#allocation2 + $0x60] sm:$0xff]  ;;  %v69_v7 = vld [vmem:[%s1103_s2 + $0x28] sm:$0xff]  ;;  %v70_v8 = vld [vmem:[%s1103_s2 + $0x30] sm:$0xff] }
  0x12   :  { %769 = vmatpush3.xpose.msk.msra.mxu0 %vm112_vm0, %v55_v1  ;;  %109 = vperm.xlu0 %865, %v71_v6   ;;  %v68_v9 = vld [vmem:[%s1103_s2 + $0x20] sm:$0xff]  ;;  %v51_v10 = vld [vmem:[#allocation2 + $0x58] sm:$0xff]  ;;  %v66_v12 = vld [vmem:[%s1103_s2 + $0x10] sm:$0xff] }
  0x13   :  { %770 = vmatprep.subr.msk.mxu0 %vm112_vm0, %v54_v2  ;;  %99 = vperm.xlu1 %866, %v69_v7   ;;  %v67_v11 = vld [vmem:[%s1103_s2 + $0x18] sm:$0xff]  ;;  %v50_v13 = vld [vmem:[#allocation2 + $0x50] sm:$0xff]  ;;  %v65_v14 = vld [vmem:[%s1103_s2 + $0x8] sm:$0xff] }
  0x14   :  { %v64_v15 = vld [vmem:[%s1103_s2] sm:$0xff]  ;;  %v49_v16 = vld [vmem:[#allocation2 + $0x48] sm:$0xff]  ;;  %v313_v17 = vld [vmem:[%s1105_s4 + $0x38] sm:$0xff] }
  0x15   :  { %v312_v18 = vld [vmem:[%s1105_s4 + $0x30] sm:$0xff]  ;;  %v48_v19 = vld [vmem:[#allocation2 + $0x40] sm:$0xff]  ;;  %v311_v20 = vld [vmem:[%s1105_s4 + $0x28] sm:$0xff] }
  0x16   :  { %771 = vmatpush3.xpose.msk.msra.mxu0 %vm112_vm0, %v54_v2  ;;  %104 = vperm.xlu0 %865, %v70_v8   ;;  %v310_v21 = vld [vmem:[%s1105_s4 + $0x20] sm:$0xff]  ;;  %v47_v22 = vld [vmem:[#allocation2 + $0x38] sm:$0xff]  ;;  %v308_v24 = vld [vmem:[%s1105_s4 + $0x10] sm:$0xff] }
  0x17   :  { %772 = vmatprep.subr.msk.mxu0 %vm112_vm0, %v53_v3  ;;  %94 = vperm.xlu1 %866, %v68_v9   ;;  %v309_v23 = vld [vmem:[%s1105_s4 + $0x18] sm:$0xff]  ;;  %v46_v25 = vld [vmem:[#allocation2 + $0x30] sm:$0xff]  ;;  %v307_v26 = vld [vmem:[%s1105_s4 + $0x8] sm:$0xff] }
  0x18   :  { %v306_v27 = vld [vmem:[%s1105_s4] sm:$0xff]  ;;  %v45_v28 = vld [vmem:[#allocation2 + $0x28] sm:$0xff]  ;;  %v43_v31 = vld [vmem:[#allocation2 + $0x18] sm:$0xff] }
  0x19   :  { %v492_v29 = vld [vmem:[%s1107_s6] sm:$0xff]  ;;  %v42_v32 = vld [vmem:[#allocation2 + $0x10] sm:$0xff]  ;;  %v41_v33 = vld [vmem:[#allocation2 + $0x8] sm:$0xff] }
  0x1a   :  { %773 = vmatpush3.xpose.msk.msra.mxu0 %vm112_vm0, %v53_v3  ;;  %89 = vperm.xlu0 %865, %v67_v11   ;;  %v44_v30 = vld [vmem:[#allocation2 + $0x20] sm:$0xff]  ;;  %v57_v35 = vld [vmem:[%s1102_s1 + $0x8] sm:$0xff]  ;;  %v58_v36 = vld [vmem:[%s1102_s1 + $0x10] sm:$0xff] }
  0x1b   :  { %774 = vmatprep.subr.msk.mxu0 %vm112_vm0, %v52_v5  ;;  %84 = vperm.xlu1 %866, %v66_v12   ;;  %v40_v34 = vld [vmem:[#allocation2] sm:$0xff]  ;;  %v59_v37 = vld [vmem:[%s1102_s1 + $0x18] sm:$0xff]  ;;  %v61_v39 = vld [vmem:[%s1102_s1 + $0x28] sm:$0xff] }
  0x1c   :  { %v60_v38 = vld [vmem:[%s1102_s1 + $0x20] sm:$0xff]  ;;  %v62_v40 = vld [vmem:[%s1102_s1 + $0x30] sm:$0xff]  ;;  %v63_v41 = vld [vmem:[%s1102_s1 + $0x38] sm:$0xff] }
  0x1d   :  { %v298_v42 = vld [vmem:[%s1104_s3] sm:$0xff]  ;;  %v299_v11 = vld [vmem:[%s1104_s3 + $0x8] sm:$0xff]  ;;  %v300_v12 = vld [vmem:[%s1104_s3 + $0x10] sm:$0xff] }
  0x1e   :  { %775 = vmatpush3.xpose.msk.msra.mxu0 %vm112_vm0, %v52_v5  ;;  %79 = vperm.xlu0 %865, %v65_v14   ;;  %v302_v14 = vld [vmem:[%s1104_s3 + $0x20] sm:$0xff] }
  0x1f   :  { %776 = vmatprep.subr.msk.mxu0 %vm112_vm0, %v51_v10  ;;  %74 = vperm.xlu1 %866, %v64_v15   ;;  %v303_v15 = vld [vmem:[%s1104_s3 + $0x28] sm:$0xff] }
  0x20   :  { %828 = vmatprep.mubr.msk.f32.mxu1 %vm112_vm0, %v298_v42 }
  0x22   :  { %777 = vmatpush3.xpose.msk.msra.mxu0 %vm112_vm0, %v51_v10  ;;  %351 = vperm.xlu0 %865, %v313_v17   ;;  %v305_v17 = vld [vmem:[%s1104_s3 + $0x38] sm:$0xff] }
  0x23   :  { %778 = vmatprep.subr.msk.mxu0 %vm112_vm0, %v50_v13  ;;  %346 = vperm.xlu1 %866, %v312_v18   ;;  %v899_v18 = vmov 0.0  }
  0x26   :  { %779 = vmatpush3.xpose.msk.msra.mxu0 %vm112_vm0, %v50_v13  ;;  %341 = vperm.xlu0 %865, %v311_v20   ;;  %v301_v13 = vld [vmem:[%s1104_s3 + $0x18] sm:$0xff] }
  0x27   :  { %780 = vmatprep.subr.msk.mxu0 %vm112_vm0, %v49_v16  ;;  %336 = vperm.xlu1 %866, %v310_v21  }
  0x2a   :  { %781 = vmatpush3.xpose.msk.msra.mxu0 %vm112_vm0, %v49_v16  ;;  %331 = vperm.xlu0 %865, %v309_v23   ;;  %v304_v16 = vld [vmem:[%s1104_s3 + $0x30] sm:$0xff] }
  0x2b   :  { %782 = vmatprep.subr.msk.mxu0 %vm112_vm0, %v48_v19  ;;  %326 = vperm.xlu1 %866, %v308_v24  }
  0x2e   :  { %783 = vmatpush3.xpose.msk.msra.mxu0 %vm112_vm0, %v48_v19  ;;  %321 = vperm.xlu0 %865, %v307_v26  }
  0x2f   :  { %784 = vmatprep.subr.msk.mxu0 %vm112_vm0, %v47_v22  ;;  %316 = vperm.xlu1 %866, %v306_v27  }
  0x32   :  { %785 = vmatpush3.xpose.msk.msra.mxu0 %vm112_vm0, %v47_v22  ;;  %495 = vperm.xlu0 %865, %v492_v29  }
  0x33   :  { %786 = vmatprep.subr.msk.mxu0 %vm112_vm0, %v46_v25 }
  0x36   :  { %787 = vmatpush3.xpose.msk.msra.mxu0 %vm112_vm0, %v46_v25 }
  0x37   :  { %788 = vmatprep.subr.msk.mxu0 %vm112_vm0, %v45_v28 }
  0x3a   :  { %789 = vmatpush3.xpose.msk.msra.mxu0 %vm112_vm0, %v45_v28 }
  0x3b   :  { %790 = vmatprep.subr.msk.mxu0 %vm112_vm0, %v44_v30 }
  0x3e   :  { %791 = vmatpush3.xpose.msk.msra.mxu0 %vm112_vm0, %v44_v30 }
  0x3f   :  { %792 = vmatprep.subr.msk.mxu0 %vm112_vm0, %v43_v31 }
  0x42   :  { %793 = vmatpush3.xpose.msk.msra.mxu0 %vm112_vm0, %v43_v31 }
  0x43   :  { %794 = vmatprep.subr.msk.mxu0 %vm112_vm0, %v42_v32 }
  0x46   :  { %795 = vmatpush3.xpose.msk.msra.mxu0 %vm112_vm0, %v42_v32 }
  0x47   :  { %796 = vmatprep.subr.msk.mxu0 %vm112_vm0, %v41_v33 }
  0x4a   :  { %797 = vmatpush3.xpose.msk.msra.mxu0 %vm112_vm0, %v41_v33 }
  0x4b   :  { %798 = vmatprep.subr.msk.mxu0 %vm112_vm0, %v40_v34 }
  0x4e   :  { %799 = vmatpush3.xpose.msk.msra.mxu0 %vm112_vm0, %v40_v34 }
  0x51   :  { %801 = vmatmul.mubr.msk.f32.vlgmr.msra.gmra.mxu0 %vm112_vm0, %v57_v35 }
  0x52   :  { %803 = vmatprep.mubr.msk.f32.mxu0 %vm112_vm0, %v58_v36 }
  0x55   :  { %804 = vmatmul.mubr.msk.f32.gmra.mxu0 %vm112_vm0, %v59_v37 }
  0x56   :  { %806 = vmatprep.mubr.msk.f32.mxu0 %vm112_vm0, %v60_v38 }
  0x59   :  { %807 = vmatmul.mubr.msk.f32.gmra.mxu0 %vm112_vm0, %v61_v39 }
  0x5a   :  { %809 = vmatprep.mubr.msk.f32.mxu0 %vm112_vm0, %v62_v40 }
  0x5d   :  { %810 = vmatmul.mubr.msk.f32.gmra.mxu0 %vm112_vm0, %v63_v41 }
  0x8d   :  { %v110_v45 = vpop.permute.xlu0 %109 }
  0x8e   :  { %v100_v47 = vpop.permute.xlu1 %99 }
  0x91   :  { %v105_v50 = vpop.permute.xlu0 %104 }
  0x92   :  { %v95_v52 = vpop.permute.xlu1 %94 }
  0x95   :  { %v90_v59 = vpop.permute.xlu0 %89 }
  0x96   :  { %v85_v62 = vpop.permute.xlu1 %84 }
  0x99   :  { %v80_v3 = vpop.permute.xlu0 %79 }
  0x9a   :  { %v75_v6 = vpop.permute.xlu1 %74 }
  0x9d   :  { %v352_v21 = vpop.permute.xlu0 %351 }
  0x9e   :  { %v347_v23 = vpop.permute.xlu1 %346 }
  0xa1   :  { %v342_v26 = vpop.permute.xlu0 %341 }
  0xa2   :  { %v337_v28 = vpop.permute.xlu1 %336 }
  0xa5   :  { %v332_v35 = vpop.permute.xlu0 %331 }
  0xa6   :  { %v327_v38 = vpop.permute.xlu1 %326 }
 0x111   :  { %v802_v43 = vpop.f32.mrf.mxu0 }
 0x112   :  { %v257_v4 = vadd.f32 %v802_v43, %v80_v3  ;;  %v322_v43 = vpop.permute.xlu0 %321 }
 0x113   :  { %v251_v44 = vpop.f32.mrf.mxu0 }
 0x114   :  { %v252_v7 = vadd.f32 %v251_v44, %v75_v6  ;;  %v291_v9 = vmax.f32 %v257_v4, 0.0 }
 0x115   :  { %v805_v46 = vpop.f32.mrf.mxu0 }
 0x116   :  { %v267_v63 = vadd.f32 %v805_v46, %v90_v59  ;;  %v290_v10 = vmax.f32 %v252_v7, 0.0  ;;  %v317_v46 = vpop.permute.xlu1 %316 }
 0x117   :  { %v261_v48 = vpop.f32.mrf.mxu0 }
 0x118   :  { %v262_v1 = vadd.f32 %v261_v48, %v85_v62  ;;  %v293_v5 = vmax.f32 %v267_v63, 0.0 }
 0x119   :  { %v808_v49 = vpop.f32.mrf.mxu0 }
 0x11a   :  { %v277_v56 = vadd.f32 %v808_v49, %v100_v47  ;;  %v292_v8 = vmax.f32 %v262_v1, 0.0 }
 0x11b   :  { %v271_v51 = vpop.f32.mrf.mxu0 }
 0x11c   :  { %v272_v60 = vadd.f32 %v271_v51, %v95_v52  ;;  %v295_v0 = vmax.f32 %v277_v56, 0.0  ;;  %v491_v51 = vld [vmem:[%s1106_s5] sm:$0xff]  ;;  %v496_v52 = vpop.permute.xlu0 %495 }
 0x11d   :  { %v811_v53 = vpop.f32.mrf.mxu0 }
 0x11e   :  { %v287_v54 = vadd.f32 %v811_v53, %v110_v45  ;;  %v294_v2 = vmax.f32 %v272_v60, 0.0 }
 0x11f   :  { %v281_v55 = vpop.f32.mrf.mxu0 }
 0x120   :  { %v297_v57 = vmax.f32 %v287_v54, 0.0  ;;  %v282_v58 = vadd.f32 %v281_v55, %v105_v50 }
 0x122   :  { %v296_v61 = vmax.f32 %v282_v58, 0.0  ;;  %812 = vmatprep.subr.mxu1 %v297_v57 }
 0x123   :  { %813 = vmatpush3.msra.mxu1 %v297_v57 }
 0x124   :  { %814 = vmatprep.subr.mxu1 %v296_v61 }
 0x125   :  { %815 = vmatpush3.msra.mxu1 %v296_v61  ;;  %v571_v61 = vlaneseq }
 0x126   :  { %816 = vmatprep.subr.mxu1 %v295_v0 }
 0x127   :  { %817 = vmatpush3.msra.mxu1 %v295_v0  ;;  %v572_v62 = vshrl.u32 %v571_v61, 7 }
 0x128   :  { %818 = vmatprep.subr.mxu1 %v294_v2 }
 0x129   :  { %819 = vmatpush3.msra.mxu1 %v294_v2  ;;  %vm585_vm2 = vcmp.eq.s32.totalorder %v572_v62, 2  ;;  %vm586_vm3 = vcmp.eq.s32.totalorder %v572_v62, 3  ;;  %vm589_vm5 = vcmp.eq.s32.totalorder %v572_v62, 4 }
 0x12a   :  { %820 = vmatprep.subr.mxu1 %v293_v5  ;;  %vm587_vm4 = vmor %vm585_vm2, %vm586_vm3 }
 0x12b   :  { %821 = vmatpush3.msra.mxu1 %v293_v5 }
 0x12c   :  { %822 = vmatprep.subr.mxu1 %v292_v8 }
 0x12d   :  { %823 = vmatpush3.msra.mxu1 %v292_v8 }
 0x12e   :  { %824 = vmatprep.subr.mxu1 %v291_v9 }
 0x12f   :  { %825 = vmatpush3.msra.mxu1 %v291_v9 }
 0x130   :  { %826 = vmatprep.subr.mxu1 %v290_v10 }
 0x131   :  { %827 = vmatpush3.msra.mxu1 %v290_v10 }
 0x132   :  { %829 = vmatmul.mubr.msk.f32.vlgmr.msra.gmra.mxu1 %vm112_vm0, %v299_v11  ;;  %840 = vmatprep.subr.mxu1 %v899_v18 }
 0x133   :  { %831 = vmatprep.mubr.msk.f32.mxu1 %vm112_vm0, %v300_v12 }
 0x136   :  { %832 = vmatmul.mubr.msk.f32.gmra.mxu1 %vm112_vm0, %v301_v13 }
 0x137   :  { %834 = vmatprep.mubr.msk.f32.mxu1 %vm112_vm0, %v302_v14 }
 0x13a   :  { %835 = vmatmul.mubr.msk.f32.gmra.mxu1 %vm112_vm0, %v303_v15 }
 0x13b   :  { %837 = vmatprep.mubr.msk.f32.mxu1 %vm112_vm0, %v304_v16 }
 0x13e   :  { %838 = vmatmul.mubr.msk.f32.gmra.mxu1 %vm112_vm0, %v305_v17 }
 0x13f   :  { %856 = vmatprep.mubr.msk.f32.mxu1 %vm900_vm1, %v899_v18 }
 0x1f2   :  { %v830_v19 = vpop.f32.mrf.mxu1 }
 0x1f3   :  { %v450_v44 = vadd.f32 %v830_v19, %v322_v43 }
 0x1f4   :  { %v444_v20 = vpop.f32.mrf.mxu1 }
 0x1f5   :  { %v445_v47 = vadd.f32 %v444_v20, %v317_v46  ;;  %v484_v49 = vmax.f32 %v450_v44, 0.0 }
 0x1f6   :  { %v833_v22 = vpop.f32.mrf.mxu1 }
 0x1f7   :  { %v460_v39 = vadd.f32 %v833_v22, %v332_v35  ;;  %v483_v50 = vmax.f32 %v445_v47, 0.0 }
 0x1f8   :  { %v454_v24 = vpop.f32.mrf.mxu1 }
 0x1f9   :  { %v455_v41 = vadd.f32 %v454_v24, %v327_v38  ;;  %v486_v45 = vmax.f32 %v460_v39, 0.0 }
 0x1fa   :  { %v836_v25 = vpop.f32.mrf.mxu1 }
 0x1fb   :  { %v470_v32 = vadd.f32 %v836_v25, %v342_v26  ;;  %v485_v48 = vmax.f32 %v455_v41, 0.0 }
 0x1fc   :  { %v464_v27 = vpop.f32.mrf.mxu1 }
 0x1fd   :  { %v465_v36 = vadd.f32 %v464_v27, %v337_v28  ;;  %v488_v40 = vmax.f32 %v470_v32, 0.0 }
 0x1fe   :  { %v839_v29 = vpop.f32.mrf.mxu1 }
 0x1ff   :  { %v480_v30 = vadd.f32 %v839_v29, %v352_v21  ;;  %v487_v42 = vmax.f32 %v465_v36, 0.0 }
 0x200   :  { %v474_v31 = vpop.f32.mrf.mxu1 }
 0x201   :  { %v490_v33 = vmax.f32 %v480_v30, 0.0  ;;  %v475_v34 = vadd.f32 %v474_v31, %v347_v23 }
 0x203   :  { %v489_v37 = vmax.f32 %v475_v34, 0.0  ;;  %841 = vmatpush3.msra.mxu1 %v490_v33 }
 0x204   :  { %842 = vmatprep.subr.mxu1 %v899_v18 }
 0x205   :  { %843 = vmatpush3.msra.mxu1 %v489_v37 }
 0x206   :  { %844 = vmatprep.subr.mxu1 %v899_v18 }
 0x207   :  { %845 = vmatpush3.msra.mxu1 %v488_v40 }
 0x208   :  { %846 = vmatprep.subr.mxu1 %v899_v18 }
 0x209   :  { %847 = vmatpush3.msra.mxu1 %v487_v42 }
 0x20a   :  { %848 = vmatprep.subr.mxu1 %v899_v18 }
 0x20b   :  { %849 = vmatpush3.msra.mxu1 %v486_v45 }
 0x20c   :  { %850 = vmatprep.subr.mxu1 %v899_v18 }
 0x20d   :  { %851 = vmatpush3.msra.mxu1 %v485_v48 }
 0x20e   :  { %852 = vmatprep.subr.mxu1 %v899_v18 }
 0x20f   :  { %853 = vmatpush3.msra.mxu1 %v484_v49 }
 0x210   :  { %854 = vmatprep.subr.mxu1 %v899_v18 }
 0x211   :  { %855 = vmatpush3.msra.mxu1 %v483_v50 }
 0x212   :  { %857 = vmatmul.mubr.msk.f32.vlgmr.msra.gmra.mxu1 %vm112_vm0, %v491_v51 }
 0x2d2   :  { %v567_v53 = vpop.f32.mrf.mxu1 }
 0x2d3   :  { %v568_v54 = vadd.f32 %v567_v53, %v496_v52 }
 0x2d4   :  { %v858_v55 = vpop.f32.mrf.mxu1 }
 0x2d5   :  { %v574_v56 = vand.u32 2147483647, %v568_v54  ;;  %v573_v0 = vmax.f32 %v568_v54, 0.0 }
 0x2d7   :  { %v575_v57 = vsub.f32 0.0, %v574_v56 }
 0x2d9   :  { %v576_v58 = vmul.f32 1.442695, %v575_v57 }
 0x2db   :  { %867 = vpow2.f32 %v576_v58 }
 0x2e8   :  { %v868_v59 = vpop.eup %867 }
 0x2e9   :  { %v578_v60 = vadd.f32 1.0, %v868_v59 }
 0x2eb   :  { %869 = vlog2.f32 %v578_v60 }
 0x2ec   :  { %871 = vtanh.f32 %v568_v54 }
 0x2f8   :  { %v870_v63 = vpop.eup %869 }
 0x2f9   :  { %v580_v1 = vmul.f32 0.6931472, %v870_v63  ;;  %v872_v2 = vpop.eup %871 }
 0x2fa   :  { %v584_v5 = vmul.f32 0.9, %v872_v2 }
 0x2fb   :  { %v581_v3 = vadd.f32 %v580_v1, %v573_v0 }
 0x2fd   :  { %v582_v4 = vadd.f32 0.01, %v581_v3 }
 0x2ff   :  { %v588_v6 = vsel %vm587_vm4, %v582_v4, %v568_v54 }
 0x300   :  { %v590_v7 = vsel %vm589_vm5, %v584_v5, %v588_v6 }
 0x301   :  { %591 = vxpose.xlu1.b32.start.end [1/1] (short) %v590_v7, 128 }
 0x37d   :  { %v607_v8 = vpop.trf.xlu1 }
 0x37e   :  { %624 = vst.msk [vmem:[#allocation4] sm:$0xff] %vm623_vm6, %v607_v8 }
 0x381   :  { %v608_v9 = vpop.trf.xlu1 }
 0x382   :  { %625 = vst.msk [vmem:[#allocation4 + $0x8] sm:$0xff] %vm623_vm6, %v608_v9 }
 0x385   :  { %v672_v10 = vld [vmem:[#allocation4] sm:$0xff]  ;;  %v609_v11 = vpop.trf.xlu1 }
 0x386   :  { %673 = vst [vmem:[%s1108_s7] sm:$0xff] %v672_v10 }
 0x389   :  { %v674_v12 = vld [vmem:[#allocation4 + $0x8] sm:$0xff]  ;;  %v610_v13 = vpop.trf.xlu1 }
 0x38a   :  { %675 = vst [vmem:[%s1108_s7 + $0x8] sm:$0xff] %v674_v12 }
 0x38d   :  { %v611_v14 = vpop.trf.xlu1 }
 0x391   :  { %v612_v15 = vpop.trf.xlu1 }
 0x395   :  { %v613_v16 = vpop.trf.xlu1 }
 0x399   :  { %v614_v17 = vpop.trf.xlu1 }
 0x39d   :  { %v615_v18 = vpop.trf.xlu1 }
 0x3a1   :  { %v616_v19 = vpop.trf.xlu1 }
 0x3a5   :  { %v617_v20 = vpop.trf.xlu1 }
 0x3a9   :  { %v618_v21 = vpop.trf.xlu1 }
 0x3ad   :  { %v619_v22 = vpop.trf.xlu1 }
 0x3b1   :  { %v620_v23 = vpop.trf.xlu1 }
 0x3b5   :  { %v621_v24 = vpop.trf.xlu1 }
 0x3b9   :  { %v622_v25 = vpop.trf.xlu1 }
 0x3ba   :  { %681 = vsyncpa [#allocation3], 1 }

</bundles_post_ra>
